<compile_context>
chip_gen: v7x
topology: tpu7x:2x2x1
jax: 0.10.0
libtpu: 0.0.40
codegen_flags: <defaults>
</compile_context>

<pallas_src>
import functools

import jax
import jax.numpy as jnp
from jax.experimental import pallas as pl
from jax.experimental.pallas import tpu as pltpu


def _round_up(a: int, b: int) -> int:
    return ((a + b - 1) // b) * b


_K_FULL_MAX = 1024   # keep full K resident (no K grid / no K pad) up to this
_TK_LARGE = 512      # K tile when K is large


def _k_tiling(k: int):
    """(k_pad, tk) as a deterministic function of K (used at pack & call time)."""
    if k <= _K_FULL_MAX:
        return k, k                       # full-dim block: legal, no padding
    return _round_up(k, _TK_LARGE), _TK_LARGE


def _mn_tiling(m: int, n_pad: int):
    """Pick (tm, tn). tn always divides n_pad (no per-call weight pad)."""
    m_8 = _round_up(max(m, 1), 8)
    small_m = m_8 <= 512

    if small_m:
        tm = m_8                          # whole batch in one tile (GEMV-ish)
    else:
        num_m = -(-m_8 // 512)            # split M evenly into <=512-row tiles
        tm = _round_up(-(-m_8 // num_m), 8)

    # Bigger weight blocks in the weight-streaming (small-M) regime.
    tn_target = 1024 if small_m else 512
    tn = 128
    for cand in (1024, 512, 384, 256, 128):
        if cand <= tn_target and n_pad % cand == 0:
            tn = cand
            break

    # v7x has 2 TensorCores: make sure some "parallel" axis has >=2 programs.
    grid_m = _round_up(m, tm) // tm
    grid_n = n_pad // tn
    if grid_m == 1 and grid_n == 1:
        if n_pad > 128:
            half = n_pad // 2
            tn = half if half % 128 == 0 else 128
        elif tm >= 16:
            tm = _round_up(tm // 2, 8)
    return tm, tn


# ---------------------------------------------------------------------------
# Kernels
# ---------------------------------------------------------------------------

def _linear_kernel_accum_in_out(x_ref, w_ref, b_ref, o_ref):
    """f32 output: accumulate directly into the k-resident output block."""
    k = pl.program_id(2)
    partial = jnp.dot(x_ref[...], w_ref[...], preferred_element_type=jnp.float32)

    @pl.when(k == 0)
    def _():
        o_ref[...] = partial              # direct write: no zero-init pass

    @pl.when(k > 0)
    def _():
        o_ref[...] += partial

    @pl.when(k == pl.num_programs(2) - 1)
    def _():
        o_ref[...] += b_ref[...].astype(jnp.float32)


def _linear_kernel_scratch_acc(x_ref, w_ref, b_ref, o_ref, acc_ref):
    """Narrow (e.g. bf16) output: f32 scratch accumulator, cast on finalize."""
    k = pl.program_id(2)
    partial = jnp.dot(x_ref[...], w_ref[...], preferred_element_type=jnp.float32)

    @pl.when(k == 0)
    def _():
        acc_ref[...] = partial

    @pl.when(k > 0)
    def _():
        acc_ref[...] += partial

    @pl.when(k == pl.num_programs(2) - 1)
    def _():
        o_ref[...] = (acc_ref[...] + b_ref[...].astype(jnp.float32)).astype(o_ref.dtype)


# ---------------------------------------------------------------------------
# Parameter packing (do ONCE at init, not per forward call)
# ---------------------------------------------------------------------------

def prepare_parallel_linear_params(split_weights, split_biases, *, stream_dtype=None):
    """Fold device shards, transpose to [K, N], pad to tile-friendly shapes.

    split_weights: (num_devices, out_per, in_features)
    split_biases : (num_devices, out_per)
    stream_dtype : e.g. jnp.bfloat16 to halve weight HBM traffic (accumulation
                   in the kernel stays float32).

    Returns (w_packed [k_pad, n_pad], b_packed [1, n_pad] float32).
    """
    num_devices, out_per, in_features = split_weights.shape
    n = num_devices * out_per

    w = split_weights.reshape(n, in_features)      # concat shards along out dim
    w_t = jnp.swapaxes(w, 0, 1)                    # (K, N): out on lanes

    k_pad, _ = _k_tiling(in_features)
    n_pad = _round_up(n, 128)
    w_t = jnp.pad(w_t, ((0, k_pad - in_features), (0, n_pad - n)))
    if stream_dtype is not None:
        w_t = w_t.astype(stream_dtype)

    b = jnp.pad(split_biases.reshape(1, n).astype(jnp.float32),
                ((0, 0), (0, n_pad - n)))
    return w_t, b


# ---------------------------------------------------------------------------
# Forward
# ---------------------------------------------------------------------------

@functools.partial(jax.jit, static_argnames=("n_out",))
def parallel_linear_packed(x, w_packed, b_packed, *, n_out):
    """x: (M, K). Returns (M, n_out) == torch.cat([x @ W_i.T + b_i], dim=1)."""
    m, k = x.shape
    k_pad, n_pad = w_packed.shape
    out_dtype = x.dtype

    k_pad_expected, tk = _k_tiling(k)
    assert k_pad == k_pad_expected, "w_packed K padding does not match x"
    assert n_pad % 128 == 0 and n_pad >= n_out, "bad packed N"

    tm, tn = _mn_tiling(m, n_pad)
    m_p = _round_up(m, tm)

    # Pad only the activations (cheap; zero K rows contribute nothing).
    x_p = x
    if (m_p, k_pad) != (m, k):
        x_p = jnp.pad(x, ((0, m_p - m), (0, k_pad - k)))
    if x_p.dtype != w_packed.dtype:
        # Match the weight streaming width (e.g. bf16); f32 accumulation inside.
        x_p = x_p.astype(w_packed.dtype)

    grid = (m_p // tm, n_pad // tn, k_pad // tk)
    grid_m, grid_n, grid_k = grid

    accum_in_out = out_dtype == jnp.float32
    kernel = _linear_kernel_accum_in_out if accum_in_out else _linear_kernel_scratch_acc
    scratch = [] if accum_in_out else [pltpu.VMEM((tm, tn), jnp.float32)]

    # Deeper weight buffering in the pure weight-streaming (small-M) regime.
    w_bufs = 3 if (tm == m_p and grid_n * grid_k >= 3) else 2
    if w_bufs != 2:
        w_spec = pl.BlockSpec((tk, tn), lambda i, j, kk: (kk, j),
                              pipeline_mode=pl.Buffered(w_bufs))
    else:
        w_spec = pl.BlockSpec((tk, tn), lambda i, j, kk: (kk, j))

    x_item = jnp.dtype(x_p.dtype).itemsize
    w_item = jnp.dtype(w_packed.dtype).itemsize
    b_item = jnp.dtype(b_packed.dtype).itemsize
    o_item = jnp.dtype(out_dtype).itemsize

    # Buffered VMEM footprint; cap below v7x's 64 MiB/TC budget.
    footprint = (2 * tm * tk * x_item
                 + w_bufs * tk * tn * w_item
                 + 2 * tn * b_item
                 + 2 * tm * tn * o_item
                 + (0 if accum_in_out else tm * tn * 4))
    vmem_limit = int(min(40 * 1024 * 1024,
                         max(16 * 1024 * 1024, 2 * footprint + 2 * 1024 * 1024)))

    # HBM traffic including re-streaming: x is read once per j block, W once
    # per i block under this grid.
    cost = pl.CostEstimate(
        flops=2 * m_p * n_pad * k_pad,
        transcendentals=0,
        bytes_accessed=(m_p * k_pad * x_item * grid_n
                        + k_pad * n_pad * w_item * grid_m
                        + n_pad * b_item * grid_m
                        + m_p * n_pad * o_item),
    )

    out_p = pl.pallas_call(
        kernel,
        out_shape=jax.ShapeDtypeStruct((m_p, n_pad), out_dtype),
        grid_spec=pltpu.PrefetchScalarGridSpec(
            num_scalar_prefetch=0,
            grid=grid,
            in_specs=[
                pl.BlockSpec((tm, tk), lambda i, j, kk: (i, kk)),   # x tile
                w_spec,                                             # W.T tile
                pl.BlockSpec((1, tn), lambda i, j, kk: (0, j)),     # bias tile
            ],
            out_specs=pl.BlockSpec((tm, tn), lambda i, j, kk: (i, j)),
            scratch_shapes=scratch,
        ),
        compiler_params=pltpu.CompilerParams(
            dimension_semantics=("parallel", "parallel", "arbitrary"),
            vmem_limit_bytes=vmem_limit,
        ),
        cost_estimate=cost,
    )(x_p, w_packed, b_packed)

    return out_p[:m, :n_out]


def parallel_linear(x, split_weights, split_biases, *, stream_dtype=None):
    """One-shot convenience wrapper (packs params on every call; prefer
    prepare_parallel_linear_params + parallel_linear_packed for repeated use)."""
    w_packed, b_packed = prepare_parallel_linear_params(
        split_weights, split_biases, stream_dtype=stream_dtype)
    n_out = split_weights.shape[0] * split_weights.shape[1]
    return parallel_linear_packed(x, w_packed, b_packed, n_out=n_out)


if __name__ == "__main__":
    # Small shapes consistent with the module: batch=8, in_features=32,
    # out_features=256 split across 2 "devices" -> out_per=128.
    batch = 8
    in_features = 32
    out_features = 256
    num_devices = 2
    out_per = out_features // num_devices

    key = jax.random.PRNGKey(0)
    kx, kw, kb = jax.random.split(key, 3)

    x = jax.random.normal(kx, (batch, in_features), dtype=jnp.float32)
    split_weights = jax.random.normal(
        kw, (num_devices, out_per, in_features), dtype=jnp.float32)
    split_biases = jax.random.normal(
        kb, (num_devices, out_per), dtype=jnp.float32)

    # Reference: concat shards along the out dim, then a plain linear.
    w_full = split_weights.reshape(out_features, in_features)
    b_full = split_biases.reshape(out_features)
    y_ref = x @ w_full.T + b_full

    # 1) f32 path (exact): params packed once at "init", forward reused.
    w_packed, b_packed = prepare_parallel_linear_params(split_weights, split_biases)
    y = parallel_linear_packed(x, w_packed, b_packed, n_out=out_features)
    jax.block_until_ready(y)
    assert y.shape == (batch, out_features)
    assert jnp.allclose(y, y_ref, atol=1e-4, rtol=1e-4), "f32 mismatch vs reference"

    # 2) bf16 weight/activation streaming, f32 accumulation, f32 output.
    w_s, b_s = prepare_parallel_linear_params(
        split_weights, split_biases, stream_dtype=jnp.bfloat16)
    y_bf = parallel_linear_packed(x, w_s, b_s, n_out=out_features)
    jax.block_until_ready(y_bf)
    assert y_bf.dtype == jnp.float32
    assert jnp.allclose(y_bf, y_ref, atol=0.3, rtol=0.05), "bf16-stream mismatch"

    # 3) bf16 activations end-to-end (exercises the scratch-accumulator kernel).
    y_b16 = parallel_linear_packed(x.astype(jnp.bfloat16), w_s, b_s, n_out=out_features)
    jax.block_until_ready(y_b16)
    assert y_b16.dtype == jnp.bfloat16
    assert jnp.allclose(y_b16.astype(jnp.float32), y_ref, atol=0.4, rtol=0.06), \
        "bf16 mismatch"

    print("KERNEL_OK")
</pallas_src>

<mosaic_0001>
module attributes {stable_mosaic.version = 11 : i64} {
  func.func @_linear_kernel_accum_in_out(%arg0: i32, %arg1: i32, %arg2: i32, %arg3: memref<8x32xf32, #tpu.memory_space<vmem>>, %arg4: memref<32x128xf32, #tpu.memory_space<vmem>>, %arg5: memref<1x128xf32, #tpu.memory_space<vmem>>, %arg6: memref<8x128xf32, #tpu.memory_space<vmem>>) attributes {dimension_semantics = [#tpu.dimension_semantics<parallel>, #tpu.dimension_semantics<parallel>, #tpu.dimension_semantics<arbitrary>], iteration_bounds = array<i64: 1, 2, 1>, scalar_prefetch = 0 : i64, scratch_operands = 0 : i64, tpu.core_type = #tpu.core_type<tc>, window_params = [{transform_indices = @transform_0, window_bounds = array<i64: 8, 32>}, {transform_indices = @transform_1, window_bounds = array<i64: 32, 128>}, {transform_indices = @transform_2, window_bounds = array<i64: 1, 128>}, {transform_indices = @transform_3, window_bounds = array<i64: 8, 128>}]} {
    %c0 = arith.constant 0 : index
    %c0_0 = arith.constant 0 : index
    %0 = vector.load %arg3[%c0, %c0_0] : memref<8x32xf32, #tpu.memory_space<vmem>>, vector<8x32xf32>
    %c0_1 = arith.constant 0 : index
    %c0_2 = arith.constant 0 : index
    %1 = vector.load %arg4[%c0_1, %c0_2] : memref<32x128xf32, #tpu.memory_space<vmem>>, vector<32x128xf32>
    %cst = arith.constant dense<0.000000e+00> : vector<8x128xf32>
    %2 = tpu.matmul %0, %1, %cst {dimension_numbers = #tpu.dot_dimension_numbers<[1], [0], [0], [1], [0, 0, 1, 1], [], []>} : vector<8x32xf32>, vector<32x128xf32>, vector<8x128xf32> -> vector<8x128xf32>
    %c0_i32 = arith.constant 0 : i32
    %3 = arith.cmpi eq, %arg2, %c0_i32 : i32
    %4 = arith.extui %3 : i1 to i32
    %c0_i32_3 = arith.constant 0 : i32
    %5 = arith.cmpi ne, %4, %c0_i32_3 : i32
    scf.if %5 {
      %c0_8 = arith.constant 0 : index
      %c0_9 = arith.constant 0 : index
      %12 = vector.load %arg6[%c0_8, %c0_9] : memref<8x128xf32, #tpu.memory_space<vmem>>, vector<8x128xf32>
      tpu.vector_store %arg6[%c0_8, %c0_9], %2 {strides = array<i32>} : memref<8x128xf32, #tpu.memory_space<vmem>>, vector<8x128xf32>,
    } else {
    }
    %c0_i32_4 = arith.constant 0 : i32
    %6 = arith.cmpi sgt, %arg2, %c0_i32_4 : i32
    %7 = arith.extui %6 : i1 to i32
    %c0_i32_5 = arith.constant 0 : i32
    %8 = arith.cmpi ne, %7, %c0_i32_5 : i32
    scf.if %8 {
      %c0_8 = arith.constant 0 : index
      %c0_9 = arith.constant 0 : index
      %12 = vector.load %arg6[%c0_8, %c0_9] : memref<8x128xf32, #tpu.memory_space<vmem>>, vector<8x128xf32>
      %13 = arith.addf %12, %2 : vector<8x128xf32>
      %c0_10 = arith.constant 0 : index
      %c0_11 = arith.constant 0 : index
      %14 = vector.load %arg6[%c0_10, %c0_11] : memref<8x128xf32, #tpu.memory_space<vmem>>, vector<8x128xf32>
      tpu.vector_store %arg6[%c0_10, %c0_11], %13 {strides = array<i32>} : memref<8x128xf32, #tpu.memory_space<vmem>>, vector<8x128xf32>,
    } else {
    }
    %c0_i32_6 = arith.constant 0 : i32
    %9 = arith.cmpi eq, %arg2, %c0_i32_6 : i32
    %10 = arith.extui %9 : i1 to i32
    %c0_i32_7 = arith.constant 0 : i32
    %11 = arith.cmpi ne, %10, %c0_i32_7 : i32
    scf.if %11 {
      %c0_8 = arith.constant 0 : index
      %c0_9 = arith.constant 0 : index
      %12 = vector.load %arg6[%c0_8, %c0_9] : memref<8x128xf32, #tpu.memory_space<vmem>>, vector<8x128xf32>
      %c0_10 = arith.constant 0 : index
      %c0_11 = arith.constant 0 : index
      %13 = vector.load %arg5[%c0_10, %c0_11] : memref<1x128xf32, #tpu.memory_space<vmem>>, vector<1x128xf32>
      %14 = vector.broadcast %13 : vector<1x128xf32> to vector<8x128xf32>
      %15 = arith.addf %12, %14 : vector<8x128xf32>
      %c0_12 = arith.constant 0 : index
      %c0_13 = arith.constant 0 : index
      %16 = vector.load %arg6[%c0_12, %c0_13] : memref<8x128xf32, #tpu.memory_space<vmem>>, vector<8x128xf32>
      tpu.vector_store %arg6[%c0_12, %c0_13], %15 {strides = array<i32>} : memref<8x128xf32, #tpu.memory_space<vmem>>, vector<8x128xf32>,
    } else {
    }
    return
  }
  func.func @transform_0(%arg0: i32, %arg1: i32, %arg2: i32) -> (i32, i32) {
    %c0_i32 = arith.constant 0 : i32
    return %arg0, %arg2 : i32, i32
  }
  func.func @transform_1(%arg0: i32, %arg1: i32, %arg2: i32) -> (i32, i32) {
    %c0_i32 = arith.constant 0 : i32
    return %arg2, %arg1 : i32, i32
  }
  func.func @transform_2(%arg0: i32, %arg1: i32, %arg2: i32) -> (i32, i32) {
    %c0_i32 = arith.constant 0 : i32
    %c0_i32_0 = arith.constant 0 : i32
    return %c0_i32, %arg1 : i32, i32
  }
  func.func @transform_3(%arg0: i32, %arg1: i32, %arg2: i32) -> (i32, i32) {
    %c0_i32 = arith.constant 0 : i32
    return %arg0, %arg1 : i32, i32
  }
}

</mosaic_0001>

<bundles_post_ra>
// kernel: parallel_linear_packed.1
= control target key start
LH: loop header
LB: loop body
LE: loop exit
PB: predicated region body
PF: predicated region fallthrough
CT: control target
= control target key end

     0   :  { %8 = vsyncpa [#allocation3], 0  ;;  %s999_s0 = inlined_call_operand.hbm [shape: f32[8,32], index: 0, kind: input, shape index: {}]   ;;  %s1000_s1 = inlined_call_operand.hbm [shape: f32[32,256], index: 1, kind: input, shape index: {}]   ;;  %s1001_s2 = inlined_call_operand.vmem [shape: f32[1,256], index: 2, kind: input, shape index: {}]   ;;  %s1002_s3 = inlined_call_operand.hbm [shape: f32[8,256], index: 3, kind: output, shape index: {}]  }
   0x1   :  { %9 = vsyncpa [#allocation6], 0 }
   0x2   :  { %11 = vsyncpa [#allocation6 + $0x1], 0 }
   0x3   :  { %12 = vsyncpa [#allocation4], 0 }
   0x4   :  { %14 = vsyncpa [#allocation4 + $0x1], 0  ;;  %s774_s12 = smov 0   ;;  %s776_s13 = smov 0  }
   0x5   :  { %s778_s14 = smov 0   ;;  %s780_s15 = smov 0  }
   0x6   :  { %s782_s16 = smov 0   ;;  %s784_s17 = smov 0  }
   0x7 LB: > { %s481_s18 = sadd.s32 4294967295, %s743_s17   ;;  %s482_s19 = sadd.s32 4294967294, %s743_s17   ;;  %s743_s17 = sphi %s784_s17, %s20_s17   ;;  %s739_s16 = sphi %s782_s16, %s1030_s16   ;;  %s735_s15 = sphi %s780_s15, %s1029_s15   ;;  %s731_s14 = sphi %s778_s14, %s1028_s14   ;;  %s727_s13 = sphi %s776_s13, %s1027_s13   ;;  %s723_s12 = sphi %s774_s12, %s1026_s12  }
   0x8   : > { %s76_s20 = sadd.s32 1, %s731_s14  ;;  %p83_p0 = scmp.ne.s32.totalorder %s731_s14, %s727_s13 }
   0x9   : > { %p84_p1 = scmp.eq.s32.totalorder %s743_s17, 0  ;;  %p89_p2 = scmp.ne.s32.totalorder %s727_s13, %s723_s12 }
   0xa   : > { %p812_p3 = scmp.eq.s32.totalorder %s481_s18, 0  ;;  %p141_p4 = scmp.eq.s32.totalorder %s481_s18, 1 }
   0xb   : > { %p816_p5 = por %p84_p1, %p83_p0  ;;  %p147_p6 = scmp.eq.s32.totalorder %s482_s19, 1 }
   0xc   : > { %s1009_s21 = scalar_select %p812_p3, 1, 0 }
   0xd   : > { %p822_p7 = por %p812_p3, %p89_p2  ;;  %p826_p8 = por %p141_p4, %p83_p0 }
   0xe   : > { %p830_p9 = por %p147_p6, %p89_p2  ;;  %p483_p10 = scmp.ge.s32.totalorder %s743_s17, 1 }
   0xf   : > { %s1011_s23 = scalar_select %p822_p7, 1, 0 }
  0x10   : > { %s1012_s24 = scalar_select %p826_p8, 1, 0 }
  0x11   : > { %s1013_s25 = scalar_select %p830_p9, 1, 0 }
  0x12   : > { %p154_p11 = scmp.lt.s32.totalorder %s743_s17, 3  ;;  %s745_s27 = smov [#allocation2]  }
  0x13   : > { %s170_s28 = sshll.u32 %s745_s27, 4  ;;  %p541_p1 = scmp.lt.s32.totalorder %s743_s17, 2  ;;  %s171_s28 = int_to_ptr.vmem [resolvable:$true] %s170_s28 }
  0x14   : > { %p837_p13 = pnand %p483_p10, %p154_p11  ;;  %s35_s4 = sadd.s32 1, %s739_s16 }
  0x15   : > { %p846_p4 = pnand %p541_p1, %p816_p5  ;;  %p857_p6 = scmp.ge.s32.totalorder %s35_s4, 2 }
  0x16   : > { %s1014_s26 = scalar_select %p837_p13, 1, 0 }
  0x17   : > { %p528_p0 = pneg %p837_p13  ;;  %s181_s6 = sand.u32 1, %s731_s14  }
  0x18   : > { %s1015_s29 = scalar_select %p846_p4, 1, 0 }
  0x19   : > { %p852_p2 = pnand %p528_p0, %p812_p3  ;;  %s599_s9 = scalar_lea.hbm %s999_s0, 128 }
  0x1a   : > { %s1017_s5 = scalar_select %p857_p6, 1, 0 }
  0x1b   : > { %p600_p5 = scmp.ne.s32.totalorder %s999_s0, %s599_s9  ;;  %p601_p10 = pneg %p852_p2 }
  0x1c   : > { %p606_p0 = scmp.lt.u32.totalorder %s599_s9, %s999_s0 }
  0x1d   : > { %p602_p11 = pnand %p601_p10, %p600_p5 }
  0x1f   : > { %p603_p1 = pneg %p602_p11 }
  0x21   : > { %p608_p12 = pnand %p606_p0, %p603_p1 }
  0x23   : > { %611 = shalt.err (!%p608_p12)
}
  0x24   : > { %s612_s22 = scalar_lea.vmem %s171_s28, 128  ;;  %p620_p3 = scmp.lt.s32.totalorder %s171_s28, %s171_s28 }
  0x25   : > { %p613_p9 = scmp.ne.s32.totalorder %s171_s28, %s612_s22  ;;  %p621_p13 = scmp.lt.s32.totalorder %s612_s22, %s612_s22 }
  0x27   : > { %p615_p8 = pnand %p613_p9, %p601_p10  ;;  %p622_p4 = por %p621_p13, %p620_p3 }
  0x29   : > { %p616_p7 = pneg %p615_p8 }
  0x2b   : > { %p623_p6 = pnand %p622_p4, %p616_p7 }
  0x2d   : > { %626 = shalt.err (!%p623_p6)
}
  0x2e   : > { %531 = dma.hbm_to_vmem [thread:$0]  (!%p852_p2), %s999_s0, 128, %s171_s28, [#allocation3]  }
  0x2f   : > { %p1018_p9 = scmp.ne.s32.totalorder %s1017_s5, 0  ;;  %s486_s8 = sshll.u32 %s181_s6, 5 }
  0x30   : > { %s487_s10 = sshll.u32 %s739_s16, 7  ;;  %s185_s19 = scalar_lea.vmem [#allocation5], %s486_s8 }
  0x31   : > { %s1032_s4 = smov (%p1018_p9, %s35_s4), 0  ;;  %s888_s18 = scalar_lea.hbm %s1000_s1, %s487_s10 }
  0x32   : > { %s72_s9 = ssub.s32 %s739_s16, %s1032_s4  ;;  %s194_s22 = sshll.u32 %s185_s19, 4  ;;  %s895_s22 = int_to_ptr.vmem [resolvable:$true] %s194_s22 }
  0x33   : > { %p74_p3 = scmp.eq.s32.totalorder %s72_s9, 0  ;;  %s897_s5 = scalar_lea.sflag [#allocation6], %s181_s6 }
  0x34   : > { %s627_s27 = scalar_lea.hbm %s888_s18, 512  ;;  %p1019_p8 = scmp.ne.s32.totalorder %s1015_s29, 0 }
  0x35   : > { %s893_s28 = scalar_select %p74_p3, %s731_s14, %s76_s20  }
  0x36   : > { %p628_p7 = scmp.ne.s32.totalorder %s888_s18, %s627_s27  ;;  %p629_p12 = pneg %p1019_p8 }
  0x37   : > { %s632_s8 = scalar_lea.hbm %s1000_s1, 1024  ;;  %p633_p2 = scmp.lt.u32.totalorder %s888_s18, %s1000_s1 }
  0x38   : > { %p630_p13 = pnand %p629_p12, %p628_p7  ;;  %p634_p6 = scmp.lt.u32.totalorder %s632_s8, %s627_s27 }
  0x39   : > { %p636_p10 = scmp.lt.u32.totalorder %s627_s27, %s888_s18 }
  0x3a   : > { %p631_p4 = pneg %p630_p13  ;;  %p635_p5 = por %p634_p6, %p633_p2 }
  0x3c   : > { %p637_p11 = por %p636_p10, %p635_p5 }
  0x3e   : > { %p638_p1 = pnand %p637_p11, %p631_p4 }
  0x40   : > { %641 = shalt.err (!%p638_p1)
}
  0x41   : > { %s642_s20 = scalar_lea.vmem %s895_s22, 512  ;;  %s746_s6 = smov [#allocation5]  }
  0x42   : > { %p643_p0 = scmp.ne.s32.totalorder %s895_s22, %s642_s20  ;;  %s647_s11 = sshll.u32 %s746_s6, 4  ;;  %s648_s11 = int_to_ptr.vmem [resolvable:$false] %s647_s11 }
  0x43   : > { %s649_s19 = scalar_lea.vmem %s648_s11, 1024  ;;  %p650_p7 = scmp.lt.s32.totalorder %s895_s22, %s648_s11 }
  0x44   : > { %p645_p9 = pnand %p643_p0, %p629_p12  ;;  %p651_p13 = scmp.lt.s32.totalorder %s649_s19, %s642_s20 }
  0x46   : > { %p646_p3 = pneg %p645_p9  ;;  %p652_p2 = por %p651_p13, %p650_p7 }
  0x48   : > { %p653_p6 = pnand %p652_p2, %p646_p3 }
  0x4a   : > { %656 = shalt.err (!%p653_p6)
}
  0x4b   : > { %s747_s27 = smov 256   ;;  %s748_s7 = smov 128  }
  0x4c   : > { %s749_s9 = smov 8   ;;  %p1020_p12 = scmp.ne.s32.totalorder %s1014_s26, 0 }
  0x4d   : > { %535 = dma.hbm_to_vmem [thread:$0]  (!%p1019_p8), %s888_s18, 512, %s895_s22, %s897_s5, %s747_s27, %s748_s7, %s749_s9  }
  0x4e   : > { %212 = sbr.rel (%p1020_p12) target bundleno = 328 (0x148), region = 32  ;;  %p1021_p4 = scmp.ne.s32.totalorder (!%p1020_p12), %s1009_s21, 0 }
  0x55   : > { %710 = dma.done.wait (%p1021_p4), [#allocation3], 128  }
  0x56   : > { %712 = vsyncadd (%p1021_p4), [#allocation3], 4294967168  ;;  %s932_s8 = sand.u32 1, %s727_s13   ;;  %p1022_p5 = scmp.ne.s32.totalorder %s1011_s23, 0 }
  0x57   : > { %s490_s10 = sshll.u32 %s932_s8, 5  ;;  %s219_s30 = scalar_lea.sflag [#allocation6], %s932_s8 }
  0x58   : > { %s222_s20 = scalar_lea.vmem [#allocation5], %s490_s10 }
  0x59   : > { %714 = dma.done.wait (%p1022_p5), %s219_s30, 512  }
  0x5a   : > { %716 = vsyncadd (%p1022_p5), %s219_s30, 4294966784  ;;  %v750_v0 = vmov 0.0|0.0   ;;  %vm751_vm0 = vmmov 0   ;;  %v752_v1 = vmov 0.0   ;;  %v253_v2 = vld [vmem:[%s222_s20] sm:$0xff]  ;;  %v254_v3 = vld [vmem:[%s222_s20 + $0x8] sm:$0xff] }
  0x5b   : > { %514 = vmatprep.subr.bf16.mxu0 %v750_v0  ;;  %511 = vmatprep.mubr.msk.f32.mxu0 %vm751_vm0, %v752_v1  ;;  %v255_v4 = vld [vmem:[%s222_s20 + $0x10] sm:$0xff]  ;;  %v515_v5 = vpack.c.bf16 %v254_v3, %v253_v2  ;;  %v256_v6 = vld [vmem:[%s222_s20 + $0x18] sm:$0xff]  ;;  %vm257_vm1 = vcmask 261120   ;;  %p249_p8 = scmp.lt.s32.totalorder %s735_s15, 1  ;;  %s491_s23 = sshll.u32 %s932_s8, 3 }
  0x5c   : > { %v518_v7 = vpack.c.bf16 %v256_v6, %v255_v4  ;;  %v252_v8 = vld [vmem:[#allocation2] sm:$0xff]  ;;  %s495_s22 = sshll.u32 %s735_s15, 7  ;;  %s247_s5 = scalar_lea.vmem [#allocation7], %s491_s23 }
  0x5d   : > { %516 = vmatpush3.bf16.msra.mxu0 %v515_v5  ;;  %s250_s21 = scalar_select %p249_p8, %s735_s15, 1 }
  0x5e   : > { %517 = vmatprep.subr.bf16.mxu0 %v750_v0  ;;  %s372_s6 = sshll.u32 %s247_s5, 4  ;;  %s950_s27 = scalar_lea.hbm %s1002_s3, %s495_s22  ;;  %s952_s6 = int_to_ptr.vmem [resolvable:$true] %s372_s6 }
  0x5f   : > { %s251_s18 = scalar_lea.vmem %s1001_s2, %s250_s21  ;;  %s357_s7 = scalar_lea.sflag [#allocation4], %s932_s8 }
  0x60   : > { %v493_v9 = vld [vmem:[%s251_s18] ss:$0 sm:$0xff]  ;;  %s657_s9 = scalar_lea.vmem %s952_s6, 128  ;;  %p1023_p11 = scmp.ne.s32.totalorder %s1012_s24, 0 }
  0x61   : > { %519 = vmatpush3.bf16.msra.mxu0 %v518_v7  ;;  %p658_p10 = scmp.ne.s32.totalorder %s952_s6, %s657_s9  ;;  %s753_s15 = smov [#allocation7]  }
  0x62   : > { %s661_s10 = sshll.u32 %s753_s15, 4  ;;  %s662_s10 = int_to_ptr.vmem [resolvable:$false] %s661_s10 }
  0x63   : > { %p659_p1 = pnand %p658_p10, %p1023_p11  ;;  %s663_s30 = scalar_lea.vmem %s662_s10, 256 }
  0x64   : > { %512 = vmatmul.mubr.msk.f32.vlgmr.msra.gmra.mrb[0].mxu0 %vm257_vm1, %v252_v8  ;;  %p664_p9 = scmp.lt.s32.totalorder %s952_s6, %s662_s10  ;;  %p665_p3 = scmp.lt.s32.totalorder %s663_s30, %s657_s9 }
  0x65   : > { %p660_p0 = pneg %p659_p1 }
  0x66   : > { %p666_p7 = por %p665_p3, %p664_p9 }
  0x68   : > { %p667_p13 = pnand %p666_p7, %p660_p0 }
 0x137   : > { %v327_v10 = vpop.f32.mrb[0].mxu0 }
 0x138   : > { %v354_v11 = vadd.f32 %v493_v9, %v327_v10  ;;  %v513_v12 = vpop.f32.mrb[1].mxu0 }
 0x13a   : > { %355 = vst [vmem:[%s247_s5] sm:$0xff] %v354_v11 }
 0x13b   : > { %670 = shalt.err (!%p667_p13)
}
 0x13c   : > { %s671_s8 = scalar_lea.hbm %s950_s27, 128  ;;  %s675_s23 = scalar_lea.hbm %s1002_s3, 256 }
 0x13d   : > { %p672_p2 = scmp.ne.s32.totalorder %s950_s27, %s671_s8  ;;  %p676_p4 = scmp.lt.u32.totalorder %s950_s27, %s1002_s3 }
 0x13e   : > { %p677_p5 = scmp.lt.u32.totalorder %s675_s23, %s671_s8  ;;  %p679_p10 = scmp.lt.u32.totalorder %s671_s8, %s950_s27 }
 0x13f   : > { %p673_p6 = pnand %p672_p2, %p1023_p11 }
 0x140   : > { %p678_p8 = por %p677_p5, %p676_p4 }
 0x141   : > { %p674_p12 = pneg %p673_p6 }
 0x142   : > { %p680_p1 = por %p679_p10, %p678_p8 }
 0x144   : > { %p681_p0 = pnand %p680_p1, %p674_p12 }
 0x146   : > { %684 = shalt.err (!%p681_p0)
}
 0x147   : > { %526 = dma.vmem_to_hbm [thread:$0]  (%p1023_p11), %s952_s6, 128, %s950_s27, %s357_s7  }
 0x148 PF: > { %s384_s18 = sand.u32 1, %s723_s12   ;;  %p1024_p9 = scmp.ne.s32.totalorder %s1013_s25, 0 }
 0x149   : > { %p1025_p3 = scmp.ge.s32.totalorder %s743_s17, 2  ;;  %s385_s22 = scalar_lea.sflag [#allocation4], %s384_s18 }
 0x14b   : > { %p537_p7 = pnand %p1025_p3, %p1024_p9 }
 0x14d   : > { %718 = dma.done.wait (!%p537_p7), %s385_s22, 128  }
 0x14e   : > { %720 = vsyncadd (!%p537_p7), %s385_s22, 4294967168  ;;  %s20_s17 = sadd.s32 1, %s743_s17   ;;  %s1026_s12 = smov %s727_s13 }
 0x14f   : > { %p17_p13 = scmp.ge.s32.totalorder %s20_s17, 4   ;;  %s1027_s13 = smov %s731_s14 }
 0x150   : > { %s1028_s14 = smov %s893_s28  ;;  %s1029_s15 = smov %s739_s16 }
 0x151   : > { %s1030_s16 = smov %s1032_s4  ;;  %19 = sbr.rel (!%p17_p13) target bundleno = 7 (0x7), region = 98 }
 0x158   :  { %390 = vsyncpa [#allocation3], 1 }
 0x159   :  { %392 = vsyncpa [#allocation3 + $0x1], 1 }
 0x15a   :  { %393 = vsyncpa [#allocation6], 1 }
 0x15b   :  { %395 = vsyncpa [#allocation6 + $0x1], 1 }
 0x15c   :  { %396 = vsyncpa [#allocation4], 1 }
 0x15d   :  { %398 = vsyncpa [#allocation4 + $0x1], 1 }

</bundles_post_ra>
